<compile_context>
chip_gen: v7x
topology: tpu7x:2x2x1
jax: 0.10.0
libtpu: 0.0.40
codegen_flags: <defaults>
</compile_context>

<pallas_src>
import functools

import jax
import jax.numpy as jnp
from jax.experimental import pallas as pl
from jax.experimental.pallas import tpu as pltpu

LANE = 128
# ~4 MiB per input per grid step (8192 rows for f32, 16384 for bf16).
TARGET_BLOCK_BYTES = 4 * 1024 * 1024
# Shard rows over both TensorCores on v7x; a serial no-op split on 1-TC chips.
NUM_CORE_SPLITS = 2


def _pick_tile_rows(rows: int, itemsize: int) -> int:
    target = TARGET_BLOCK_BYTES // (LANE * itemsize)
    target = max(16, (target // 16) * 16)  # multiple of 16: bf16 sublane packing
    return rows if rows <= target else target


def _mse_kernel(old_ref, new_ref, out_ref, *,
                rows_total, tile_rows, blocks_per_core, needs_mask):
    i = pl.program_id(1)  # reduction axis (last, "arbitrary")

    @pl.when(i == 0)
    def _init():
        out_ref[...] = jnp.zeros_like(out_ref)

    # Cast per-tile in VMEM so HBM traffic stays in the inputs' native dtype.
    d = old_ref[...].astype(jnp.float32) - new_ref[...].astype(jnp.float32)
    sq = d * d

    if needs_mask:
        # Mask rows past the true end (partial last block and the clamped
        # duplicate block a core may see when the block count is odd).
        c = pl.program_id(0)
        logical_block = c * blocks_per_core + i
        row_ids = logical_block * tile_rows + jax.lax.broadcasted_iota(
            jnp.int32, sq.shape, 0)
        sq = jnp.where(row_ids < rows_total, sq, 0.0)

    if tile_rows % 8 == 0:
        # Pure elementwise vreg adds (VPU); the one-time cross-sublane/lane
        # reduce is deferred to the wrapper on the tiny (cores*8, 128) output.
        out_ref[...] += sq.reshape(tile_rows // 8, 8, LANE).sum(axis=0)
    else:
        # Small single-block fallback (tile_rows == rows, not a multiple of 8).
        out_ref[0:1, :] += jnp.sum(sq, axis=0, keepdims=True)


def mse_loss(x):
    """x is a dict with 'old_values' and 'new_values' (same shape)."""
    old = x["old_values"]
    new = x["new_values"]
    assert old.shape == new.shape, "MSELoss inputs must share a shape"

    old_flat = old.reshape(-1)
    new_flat = new.reshape(-1)
    n = old_flat.shape[0]
    rows = n // LANE
    aligned = rows * LANE
    rem = n - aligned

    total = jnp.float32(0.0)

    if rows > 0:
        if rem:
            # TODO(synk): mask lanes in-kernel from a prefetched element count to
            # avoid materializing this aligned-prefix slice on unaligned sizes.
            old2d = jax.lax.slice(old_flat, (0,), (aligned,)).reshape(rows, LANE)
            new2d = jax.lax.slice(new_flat, (0,), (aligned,)).reshape(rows, LANE)
        else:
            old2d = old_flat.reshape(rows, LANE)  # pure reshape, no HBM copy
            new2d = new_flat.reshape(rows, LANE)

        itemsize = max(jnp.dtype(old2d.dtype).itemsize,
                       jnp.dtype(new2d.dtype).itemsize)
        tile_rows = _pick_tile_rows(rows, itemsize)
        num_blocks = pl.cdiv(rows, tile_rows)
        num_cores = NUM_CORE_SPLITS if num_blocks >= NUM_CORE_SPLITS else 1
        blocks_per_core = pl.cdiv(num_blocks, num_cores)
        needs_mask = (num_cores * blocks_per_core * tile_rows) != rows
        clamp = (num_cores * blocks_per_core) > num_blocks

        if clamp:
            # Odd block count: the last logical block of the last core maps to a
            # valid block (re-read) and is fully masked in-kernel.
            def in_map(c, i):
                return (jnp.minimum(c * blocks_per_core + i, num_blocks - 1), 0)
        else:
            def in_map(c, i):
                return (c * blocks_per_core + i, 0)

        kernel = functools.partial(
            _mse_kernel,
            rows_total=rows,
            tile_rows=tile_rows,
            blocks_per_core=blocks_per_core,
            needs_mask=needs_mask,
        )

        bytes_in = rows * LANE * (jnp.dtype(old2d.dtype).itemsize +
                                  jnp.dtype(new2d.dtype).itemsize)
        acc = pl.pallas_call(
            kernel,
            out_shape=jax.ShapeDtypeStruct((num_cores * 8, LANE), jnp.float32),
            grid_spec=pltpu.PrefetchScalarGridSpec(
                num_scalar_prefetch=0,
                grid=(num_cores, blocks_per_core),
                in_specs=[
                    pl.BlockSpec((tile_rows, LANE), in_map),
                    pl.BlockSpec((tile_rows, LANE), in_map),
                ],
                out_specs=pl.BlockSpec((8, LANE), lambda c, i: (c, 0)),
            ),
            compiler_params=pltpu.CompilerParams(
                dimension_semantics=("parallel", "arbitrary"),
                vmem_limit_bytes=48 * 1024 * 1024,
            ),
            cost_estimate=pl.CostEstimate(
                flops=3 * rows * LANE,
                transcendentals=0,
                bytes_accessed=int(bytes_in) + num_cores * 8 * LANE * 4,
            ),
        )(old2d, new2d)
        total = total + jnp.sum(acc)

    if rem:
        # Sub-128 tail handled with plain jnp (a few dozen elements at most).
        old_tail = jax.lax.slice(old_flat, (aligned,), (n,)).astype(jnp.float32)
        new_tail = jax.lax.slice(new_flat, (aligned,), (n,)).astype(jnp.float32)
        dt = old_tail - new_tail
        total = total + jnp.sum(dt * dt)

    return total / jnp.float32(n)


if __name__ == "__main__":
    key = jax.random.PRNGKey(0)

    # Primary check: small shape consistent with the module (batch=2, ch=4, 16x16).
    k1, k2 = jax.random.split(key)
    shape = (2, 4, 16, 16)
    old_values = jax.random.normal(k1, shape, dtype=jnp.float32)
    new_values = jax.random.normal(k2, shape, dtype=jnp.float32)
    x = {"old_values": old_values, "new_values": new_values}
    loss = mse_loss(x)
    jax.block_until_ready(loss)
    ref = jnp.mean((old_values - new_values) ** 2)
    assert jnp.allclose(loss, ref, rtol=1e-6, atol=1e-6), (loss, ref)

    # Secondary check: lane-unaligned element count (wrapper tail path) with a
    # single full-array block whose row count is not a multiple of 8.
    k3, k4 = jax.random.split(k1)
    shape2 = (520, 521)
    old2 = jax.random.normal(k3, shape2, dtype=jnp.float32)
    new2 = jax.random.normal(k4, shape2, dtype=jnp.float32)
    loss2 = mse_loss({"old_values": old2, "new_values": new2})
    jax.block_until_ready(loss2)
    ref2 = jnp.mean((old2 - new2) ** 2)
    assert jnp.allclose(loss2, ref2, rtol=1e-5, atol=1e-6), (loss2, ref2)

    # Third check: multi-block grid with an odd block count -> exercises the
    # two-core split, the clamped index_map and partial-last-block masking.
    k5, k6 = jax.random.split(k2)
    shape3 = (20000, 128)  # 20000 rows -> 3 blocks of 8192 rows across 2 cores
    old3 = jax.random.normal(k5, shape3, dtype=jnp.float32)
    new3 = jax.random.normal(k6, shape3, dtype=jnp.float32)
    loss3 = mse_loss({"old_values": old3, "new_values": new3})
    jax.block_until_ready(loss3)
    ref3 = jnp.mean((old3 - new3) ** 2)
    assert jnp.allclose(loss3, ref3, rtol=5e-5, atol=1e-6), (loss3, ref3)

    print("KERNEL_OK")
</pallas_src>

<mosaic_0001>
module attributes {stable_mosaic.version = 11 : i64} {
  func.func @_mse_kernel(%arg0: i32, %arg1: i32, %arg2: memref<16x128xf32, #tpu.memory_space<vmem>>, %arg3: memref<16x128xf32, #tpu.memory_space<vmem>>, %arg4: memref<8x128xf32, #tpu.memory_space<vmem>>) attributes {dimension_semantics = [#tpu.dimension_semantics<parallel>, #tpu.dimension_semantics<arbitrary>], iteration_bounds = array<i64: 1, 1>, scalar_prefetch = 0 : i64, scratch_operands = 0 : i64, tpu.core_type = #tpu.core_type<tc>, window_params = [{transform_indices = @transform_0, window_bounds = array<i64: 16, 128>}, {transform_indices = @transform_1, window_bounds = array<i64: 16, 128>}, {transform_indices = @transform_2, window_bounds = array<i64: 8, 128>}]} {
    %c0_i32 = arith.constant 0 : i32
    %0 = arith.cmpi eq, %arg1, %c0_i32 : i32
    %1 = arith.extui %0 : i1 to i32
    %c0_i32_0 = arith.constant 0 : i32
    %2 = arith.cmpi ne, %1, %c0_i32_0 : i32
    scf.if %2 {
      %cst_8 = arith.constant 0.000000e+00 : f32
      %12 = vector.broadcast %cst_8 : f32 to vector<8x128xf32>
      %c0_9 = arith.constant 0 : index
      %c0_10 = arith.constant 0 : index
      %13 = vector.load %arg4[%c0_9, %c0_10] : memref<8x128xf32, #tpu.memory_space<vmem>>, vector<8x128xf32>
      tpu.vector_store %arg4[%c0_9, %c0_10], %12 {strides = array<i32>} : memref<8x128xf32, #tpu.memory_space<vmem>>, vector<8x128xf32>,
    } else {
    }
    %c0 = arith.constant 0 : index
    %c0_1 = arith.constant 0 : index
    %3 = vector.load %arg2[%c0, %c0_1] : memref<16x128xf32, #tpu.memory_space<vmem>>, vector<16x128xf32>
    %c0_2 = arith.constant 0 : index
    %c0_3 = arith.constant 0 : index
    %4 = vector.load %arg3[%c0_2, %c0_3] : memref<16x128xf32, #tpu.memory_space<vmem>>, vector<16x128xf32>
    %5 = arith.subf %3, %4 : vector<16x128xf32>
    %6 = arith.mulf %5, %5 : vector<16x128xf32>
    %c0_4 = arith.constant 0 : index
    %c0_5 = arith.constant 0 : index
    %7 = vector.load %arg4[%c0_4, %c0_5] : memref<8x128xf32, #tpu.memory_space<vmem>>, vector<8x128xf32>
    %8 = vector.shape_cast %6 : vector<16x128xf32> to vector<2x8x128xf32>
    %cst = arith.constant dense<0.000000e+00> : vector<8x128xf32>
    %9 = vector.multi_reduction <add>, %8, %cst [0] : vector<2x8x128xf32> to vector<8x128xf32>
    %10 = arith.addf %7, %9 : vector<8x128xf32>
    %c0_6 = arith.constant 0 : index
    %c0_7 = arith.constant 0 : index
    %11 = vector.load %arg4[%c0_6, %c0_7] : memref<8x128xf32, #tpu.memory_space<vmem>>, vector<8x128xf32>
    tpu.vector_store %arg4[%c0_6, %c0_7], %10 {strides = array<i32>} : memref<8x128xf32, #tpu.memory_space<vmem>>, vector<8x128xf32>,
    return
  }
  func.func @transform_0(%arg0: i32, %arg1: i32) -> (i32, i32) {
    %c1_i32 = arith.constant 1 : i32
    %0 = arith.muli %arg0, %c1_i32 : i32
    %1 = arith.addi %0, %arg1 : i32
    %c0_i32 = arith.constant 0 : i32
    %c0_i32_0 = arith.constant 0 : i32
    return %1, %c0_i32 : i32, i32
  }
  func.func @transform_1(%arg0: i32, %arg1: i32) -> (i32, i32) {
    %c1_i32 = arith.constant 1 : i32
    %0 = arith.muli %arg0, %c1_i32 : i32
    %1 = arith.addi %0, %arg1 : i32
    %c0_i32 = arith.constant 0 : i32
    %c0_i32_0 = arith.constant 0 : i32
    return %1, %c0_i32 : i32, i32
  }
  func.func @transform_2(%arg0: i32, %arg1: i32) -> (i32, i32) {
    %c0_i32 = arith.constant 0 : i32
    %c0_i32_0 = arith.constant 0 : i32
    return %arg0, %c0_i32 : i32, i32
  }
}

</mosaic_0001>

<bundles_post_ra>
// kernel: tpu_custom_call.1
= control target key start
LH: loop header
LB: loop body
LE: loop exit
PB: predicated region body
PF: predicated region fallthrough
CT: control target
= control target key end

     0   :  { %7 = vsyncpa [#allocation3], 0  ;;  %s219_s0 = inlined_call_operand.hbm [shape: f32[16,128], index: 0, kind: input, shape index: {}]   ;;  %s220_s1 = inlined_call_operand.hbm [shape: f32[16,128], index: 1, kind: input, shape index: {}]   ;;  %s221_s2 = inlined_call_operand.hbm [shape: f32[8,128], index: 2, kind: output, shape index: {}]  }
   0x1   :  { %8 = vsyncpa [#allocation6], 0 }
   0x2   :  { %9 = vsyncpa [#allocation4], 0  ;;  %s163_s9 = smov [#allocation2]   ;;  %s91_s13 = scalar_lea.hbm %s219_s0, 256 }
   0x3   :  { %s19_s10 = sshll.u32 %s163_s9, 4  ;;  %p92_p0 = scmp.ne.s32.totalorder %s219_s0, %s91_s13  ;;  %s20_s10 = int_to_ptr.vmem [resolvable:$true] %s19_s10 }
   0x4   :  { %p95_p1 = scmp.lt.u32.totalorder %s91_s13, %s219_s0 }
   0x6   :  { %p97_p2 = pnand %p95_p1, %p92_p0 }
   0x8   :  { %100 = shalt.err (!%p97_p2)
}
   0x9   :  { %s101_s18 = scalar_lea.vmem %s20_s10, 256  ;;  %p106_p4 = scmp.lt.s32.totalorder %s20_s10, %s20_s10 }
   0xa   :  { %p102_p3 = scmp.ne.s32.totalorder %s20_s10, %s101_s18  ;;  %p107_p5 = scmp.lt.s32.totalorder %s101_s18, %s101_s18 }
   0xc   :  { %p108_p6 = por %p107_p5, %p106_p4 }
   0xe   :  { %p109_p7 = pnand %p108_p6, %p102_p3 }
  0x10   :  { %112 = shalt.err (!%p109_p7)
}
  0x11   :  { %s164_s19 = smov 128   ;;  %s165_s20 = smov 8  }
  0x12   :  { %25 = dma.hbm_to_vmem [thread:$0]  %s219_s0, 256, %s20_s10, [#allocation3], %s164_s19, %s164_s19, %s165_s20  }
  0x13   :  { %s166_s23 = smov [#allocation5]   ;;  %s113_s27 = scalar_lea.hbm %s220_s1, 256 }
  0x14   :  { %s35_s24 = sshll.u32 %s166_s23, 4  ;;  %p114_p8 = scmp.ne.s32.totalorder %s220_s1, %s113_s27  ;;  %s36_s24 = int_to_ptr.vmem [resolvable:$true] %s35_s24 }
  0x15   :  { %p117_p9 = scmp.lt.u32.totalorder %s113_s27, %s220_s1 }
  0x17   :  { %p119_p10 = pnand %p117_p9, %p114_p8 }
  0x19   :  { %122 = shalt.err (!%p119_p10)
}
  0x1a   :  { %s123_s4 = scalar_lea.vmem %s36_s24, 256  ;;  %p128_p12 = scmp.lt.s32.totalorder %s36_s24, %s36_s24 }
  0x1b   :  { %p124_p11 = scmp.ne.s32.totalorder %s36_s24, %s123_s4  ;;  %p129_p13 = scmp.lt.s32.totalorder %s123_s4, %s123_s4 }
  0x1d   :  { %p130_p0 = por %p129_p13, %p128_p12 }
  0x1f   :  { %p131_p1 = pnand %p130_p0, %p124_p11 }
  0x21   :  { %134 = shalt.err (!%p131_p1)
}
  0x22   :  { %41 = dma.hbm_to_vmem [thread:$0]  %s220_s1, 256, %s36_s24, [#allocation6], %s164_s19, %s164_s19, %s165_s20  }
  0x23   :  { %157 = dma.done.wait [#allocation3], 256  }
  0x24   :  { %158 = vsyncadd [#allocation3], 4294967040 }
  0x25   :  { %159 = dma.done.wait [#allocation6], 256  }
  0x26   :  { %160 = vsyncadd [#allocation6], 4294967040  ;;  %v57_v0 = vld [vmem:[#allocation2] sm:$0xff]  ;;  %v58_v1 = vld [vmem:[#allocation2 + $0x8] sm:$0xff]  ;;  %s167_s6 = smov [#allocation7]  }
  0x27   :  { %v59_v2 = vld [vmem:[#allocation5] sm:$0xff]  ;;  %v60_v3 = vld [vmem:[#allocation5 + $0x8] sm:$0xff]  ;;  %s75_s7 = sshll.u32 %s167_s6, 4  ;;  %s76_s7 = int_to_ptr.vmem [resolvable:$true] %s75_s7 }
  0x28   :  { %v61_v4 = vsub.f32 %v57_v0, %v59_v2  ;;  %v62_v5 = vsub.f32 %v58_v1, %v60_v3  ;;  %s135_s8 = scalar_lea.vmem %s76_s7, 128  ;;  %p140_p3 = scmp.lt.s32.totalorder %s76_s7, %s76_s7 }
  0x29   :  { %p136_p2 = scmp.ne.s32.totalorder %s76_s7, %s135_s8  ;;  %p141_p4 = scmp.lt.s32.totalorder %s135_s8, %s135_s8 }
  0x2a   :  { %v63_v6 = vmul.f32 %v61_v4, %v61_v4  ;;  %v64_v7 = vmul.f32 %v62_v5, %v62_v5 }
  0x2b   :  { %p142_p5 = por %p141_p4, %p140_p3 }
  0x2c   :  { %v66_v8 = vadd.f32 %v64_v7, %v63_v6 }
  0x2d   :  { %p143_p6 = pnand %p142_p5, %p136_p2 }
  0x2e   :  { %68 = vst [vmem:[#allocation7] sm:$0xff] %v66_v8 }
  0x2f   :  { %146 = shalt.err (!%p143_p6)
}
  0x30   :  { %s147_s10 = scalar_lea.hbm %s221_s2, 128 }
  0x31   :  { %p148_p7 = scmp.ne.s32.totalorder %s221_s2, %s147_s10  ;;  %p151_p8 = scmp.lt.u32.totalorder %s147_s10, %s221_s2 }
  0x33   :  { %p153_p9 = pnand %p151_p8, %p148_p7 }
  0x35   :  { %156 = shalt.err (!%p153_p9)
}
  0x36   :  { %78 = dma.vmem_to_hbm [thread:$0]  %s76_s7, 128, %s221_s2, [#allocation4]  }
  0x37   :  { %161 = dma.done.wait [#allocation4], 128  }
  0x38   :  { %162 = vsyncadd [#allocation4], 4294967168 }
  0x39   :  { %82 = vsyncpa [#allocation3], 1 }
  0x3a   :  { %83 = vsyncpa [#allocation6], 1 }
  0x3b   :  { %84 = vsyncpa [#allocation4], 1 }

</bundles_post_ra>
